<compile_context>
chip_gen: v7x
topology: tpu7x:2x2x1
jax: 0.10.0
libtpu: 0.0.40
codegen_flags: <defaults>
</compile_context>

<pallas_src>
import functools

import jax
import jax.numpy as jnp
from jax.experimental import pallas as pl
from jax.experimental.pallas import tpu as pltpu

EPS = 1e-5          # nn.LayerNorm default eps
LANE = 128          # TPU lane width
ROW_TILE = 256      # max rows per grid step (multiple of 8; keeps VMEM small, MXU-M full)
CLASS_TILE = 256    # max class columns per grid step (multiple of 128; fills 256-wide MXU)


# ------------------------------------------------------------------ fused kernel
def _head_kernel(x_ref, gb_ref, w_ref, b_ref, o_ref):
    # x_ref : (Tr, D)   activations tile, native dtype (f32 or bf16)
    # gb_ref: (2, D)    f32, row 0 = gamma, row 1 = beta
    # w_ref : (D, Tn)   bf16 Linear weight tile (class-padded, lane-dense)
    # b_ref : (1, Tn)   f32  Linear bias tile
    # o_ref : (Tr, Tn)  f32  logits tile (unmasked lane-dense store)
    x = x_ref[...].astype(jnp.float32)           # LN statistics in f32 on the VPU
    gamma = gb_ref[0:1, :]
    beta = gb_ref[1:2, :]

    mu = jnp.mean(x, axis=-1, keepdims=True)
    var = jnp.mean((x - mu) ** 2, axis=-1, keepdims=True)
    xn = (x - mu) * jax.lax.rsqrt(var + EPS) * gamma + beta

    # bf16 MXU operands, f32 accumulation, f32 bias add.
    logits = jnp.dot(xn.astype(jnp.bfloat16), w_ref[...],
                     preferred_element_type=jnp.float32) + b_ref[...]
    o_ref[...] = logits.astype(o_ref.dtype)


# ------------------------------------------------------------------ params
def init_params(key, input_dim, num_classes):
    kw, kb = jax.random.split(key)
    return {
        "gamma": jnp.ones((input_dim,), jnp.float32),
        "beta": jnp.zeros((input_dim,), jnp.float32),
        "w": 0.02 * jax.random.normal(kw, (input_dim, num_classes), jnp.float32),
        "b": 0.02 * jax.random.normal(kb, (num_classes,), jnp.float32),
    }


def prep_params(params):
    """ONE-TIME packing (call at init, never per forward):
    gamma/beta -> (2, D); pad W/b class columns up to a multiple of the class tile
    (lane-dense output store); cast the matmul weight to bf16."""
    D, C = params["w"].shape
    cp_lane = pl.cdiv(C, LANE) * LANE
    tn = min(CLASS_TILE, cp_lane)
    Cp = pl.cdiv(C, tn) * tn
    gb = jnp.stack([params["gamma"], params["beta"]], axis=0)                       # (2, D)
    w_p = jnp.zeros((D, Cp), jnp.float32).at[:, :C].set(params["w"]).astype(jnp.bfloat16)
    b_p = jnp.zeros((1, Cp), jnp.float32).at[0, :C].set(params["b"])
    return gb, w_p, b_p


# ------------------------------------------------------------------ wrapper
@functools.partial(jax.jit, static_argnames=("num_classes",))
def vit_classifier_head_pallas(x, gb, w_p, b_p, num_classes):
    lead = x.shape[:-1]
    D = x.shape[-1]
    Cp = w_p.shape[1]
    C = num_classes

    rows = 1
    for d in lead:
        rows *= d
    x2 = x.reshape(rows, D)                      # native dtype; no wrapper-side upcast

    # Row tiling: cap at ROW_TILE rows per step; small row counts are rounded up
    # to a multiple of 8 (sublane constraint) and zero-padded.
    if rows >= ROW_TILE:
        row_tile = ROW_TILE
    else:
        row_tile = rows if rows % 8 == 0 else ((rows + 7) // 8) * 8
    rows_p = pl.cdiv(rows, row_tile) * row_tile
    if rows_p != rows:
        x2 = jnp.pad(x2, ((0, rows_p - rows), (0, 0)))

    tn = min(CLASS_TILE, Cp)                     # Cp is a multiple of tn by construction
    grid = (rows_p // row_tile, Cp // tn)
    class_invariant = grid[1] == 1               # weight/bias never change across the grid

    def _spec(shape, imap, single_buffer):
        if single_buffer:
            # Grid-invariant operand: single-buffer it (never re-fetched).
            return pl.BlockSpec(shape, imap, pipeline_mode=pl.Buffered(1))
        return pl.BlockSpec(shape, imap)

    out = pl.pallas_call(
        _head_kernel,
        out_shape=jax.ShapeDtypeStruct((rows_p, Cp), jnp.float32),
        grid=grid,
        in_specs=[
            _spec((row_tile, D), lambda i, j: (i, 0), False),
            _spec((2, D), lambda i, j: (0, 0), True),
            _spec((D, tn), lambda i, j: (0, j), class_invariant),
            _spec((1, tn), lambda i, j: (0, j), class_invariant),
        ],
        out_specs=pl.BlockSpec((row_tile, tn), lambda i, j: (i, j)),
        compiler_params=pltpu.CompilerParams(
            dimension_semantics=("parallel", "parallel")),
    )(x2, gb, w_p, b_p)

    # Drop row/class padding and restore leading dims (fused by XLA under jit).
    return out[:rows, :C].reshape(*lead, C)


# ------------------------------------------------------------------ pure-JAX reference (f32)
def vit_classifier_head_ref(x, params):
    mu = jnp.mean(x, axis=-1, keepdims=True)
    var = jnp.mean((x - mu) ** 2, axis=-1, keepdims=True)
    xn = (x - mu) / jnp.sqrt(var + EPS) * params["gamma"] + params["beta"]
    return xn @ params["w"] + params["b"]


# ------------------------------------------------------------------ main
if __name__ == "__main__":
    # ViTClassifierHead(input_dim=32, num_classes=10) on (batch=2, seq=8, hidden=32)
    B, N, D = 2, 8, 32
    num_classes = 10

    key = jax.random.PRNGKey(0)
    kx, kp = jax.random.split(key)
    x = jax.random.normal(kx, (B, N, D), dtype=jnp.float32)
    params = init_params(kp, D, num_classes)

    # One-time weight prep, hoisted out of the forward path.
    gb, w_p, b_p = prep_params(params)

    out = vit_classifier_head_pallas(x, gb, w_p, b_p, num_classes)
    out = jax.block_until_ready(out)

    ref = vit_classifier_head_ref(x, params)
    assert out.shape == (B, N, num_classes)
    # bf16 MXU operands -> slightly looser tolerance vs the f32 reference.
    assert jnp.allclose(out, ref, atol=1e-2, rtol=1e-2), "mismatch vs reference"

    print("KERNEL_OK")
</pallas_src>

<mosaic_0001>
module attributes {stable_mosaic.version = 11 : i64} {
  func.func @_head_kernel(%arg0: i32, %arg1: i32, %arg2: memref<16x32xf32, #tpu.memory_space<vmem>>, %arg3: memref<2x32xf32, #tpu.memory_space<vmem>>, %arg4: memref<32x128xbf16, #tpu.memory_space<vmem>>, %arg5: memref<1x128xf32, #tpu.memory_space<vmem>>, %arg6: memref<16x128xf32, #tpu.memory_space<vmem>>) attributes {dimension_semantics = [#tpu.dimension_semantics<parallel>, #tpu.dimension_semantics<parallel>], iteration_bounds = array<i64: 1, 1>, scalar_prefetch = 0 : i64, scratch_operands = 0 : i64, tpu.core_type = #tpu.core_type<tc>, window_params = [{transform_indices = @transform_0, window_bounds = array<i64: 16, 32>}, {pipeline_mode = #tpu.pipeline_mode<synchronous>, transform_indices = @transform_1, window_bounds = array<i64: 2, 32>}, {pipeline_mode = #tpu.pipeline_mode<synchronous>, transform_indices = @transform_2, window_bounds = array<i64: 32, 128>}, {pipeline_mode = #tpu.pipeline_mode<synchronous>, transform_indices = @transform_3, window_bounds = array<i64: 1, 128>}, {transform_indices = @transform_4, window_bounds = array<i64: 16, 128>}]} {
    %c0 = arith.constant 0 : index
    %c0_0 = arith.constant 0 : index
    %0 = vector.load %arg2[%c0, %c0_0] : memref<16x32xf32, #tpu.memory_space<vmem>>, vector<16x32xf32>
    %c0_1 = arith.constant 0 : index
    %c0_2 = arith.constant 0 : index
    %1 = vector.load %arg3[%c0_1, %c0_2] : memref<2x32xf32, #tpu.memory_space<vmem>>, vector<1x32xf32>
    %c1 = arith.constant 1 : index
    %c0_3 = arith.constant 0 : index
    %2 = vector.load %arg3[%c1, %c0_3] : memref<2x32xf32, #tpu.memory_space<vmem>>, vector<1x32xf32>
    %cst = arith.constant dense<0.000000e+00> : vector<16xf32>
    %3 = vector.multi_reduction <add>, %0, %cst [1] : vector<16x32xf32> to vector<16xf32>
    %4 = vector.shape_cast %3 : vector<16xf32> to vector<16x1xf32>
    %cst_4 = arith.constant 3.200000e+01 : f32
    %5 = vector.broadcast %cst_4 : f32 to vector<16x1xf32>
    %6 = arith.divf %4, %5 : vector<16x1xf32>
    %7 = vector.broadcast %6 : vector<16x1xf32> to vector<16x32xf32>
    %8 = arith.subf %0, %7 : vector<16x32xf32>
    %9 = arith.mulf %8, %8 : vector<16x32xf32>
    %cst_5 = arith.constant dense<0.000000e+00> : vector<16xf32>
    %10 = vector.multi_reduction <add>, %9, %cst_5 [1] : vector<16x32xf32> to vector<16xf32>
    %11 = vector.shape_cast %10 : vector<16xf32> to vector<16x1xf32>
    %cst_6 = arith.constant 3.200000e+01 : f32
    %12 = vector.broadcast %cst_6 : f32 to vector<16x1xf32>
    %13 = arith.divf %11, %12 : vector<16x1xf32>
    %14 = vector.broadcast %6 : vector<16x1xf32> to vector<16x32xf32>
    %15 = arith.subf %0, %14 : vector<16x32xf32>
    %cst_7 = arith.constant 9.99999974E-6 : f32
    %16 = vector.broadcast %cst_7 : f32 to vector<16x1xf32>
    %17 = arith.addf %13, %16 : vector<16x1xf32>
    %18 = math.rsqrt %17 : vector<16x1xf32>
    %19 = vector.broadcast %18 : vector<16x1xf32> to vector<16x32xf32>
    %20 = arith.mulf %15, %19 : vector<16x32xf32>
    %21 = vector.broadcast %1 : vector<1x32xf32> to vector<16x32xf32>
    %22 = arith.mulf %20, %21 : vector<16x32xf32>
    %23 = vector.broadcast %2 : vector<1x32xf32> to vector<16x32xf32>
    %24 = arith.addf %22, %23 : vector<16x32xf32>
    %25 = arith.truncf %24 : vector<16x32xf32> to vector<16x32xbf16>
    %c0_8 = arith.constant 0 : index
    %c0_9 = arith.constant 0 : index
    %26 = vector.load %arg4[%c0_8, %c0_9] : memref<32x128xbf16, #tpu.memory_space<vmem>>, vector<32x128xbf16>
    %cst_10 = arith.constant dense<0.000000e+00> : vector<16x128xf32>
    %27 = tpu.matmul %25, %26, %cst_10 {dimension_numbers = #tpu.dot_dimension_numbers<[1], [0], [0], [1], [0, 0, 1, 1], [], []>} : vector<16x32xbf16>, vector<32x128xbf16>, vector<16x128xf32> -> vector<16x128xf32>
    %c0_11 = arith.constant 0 : index
    %c0_12 = arith.constant 0 : index
    %28 = vector.load %arg5[%c0_11, %c0_12] : memref<1x128xf32, #tpu.memory_space<vmem>>, vector<1x128xf32>
    %29 = vector.broadcast %28 : vector<1x128xf32> to vector<16x128xf32>
    %30 = arith.addf %27, %29 : vector<16x128xf32>
    %c0_13 = arith.constant 0 : index
    %c0_14 = arith.constant 0 : index
    %31 = vector.load %arg6[%c0_13, %c0_14] : memref<16x128xf32, #tpu.memory_space<vmem>>, vector<16x128xf32>
    tpu.vector_store %arg6[%c0_13, %c0_14], %30 {strides = array<i32>} : memref<16x128xf32, #tpu.memory_space<vmem>>, vector<16x128xf32>,
    return
  }
  func.func @transform_0(%arg0: i32, %arg1: i32) -> (i32, i32) {
    %c0_i32 = arith.constant 0 : i32
    %c0_i32_0 = arith.constant 0 : i32
    return %arg0, %c0_i32 : i32, i32
  }
  func.func @transform_1(%arg0: i32, %arg1: i32) -> (i32, i32) {
    %c0_i32 = arith.constant 0 : i32
    %c0_i32_0 = arith.constant 0 : i32
    %c0_i32_1 = arith.constant 0 : i32
    return %c0_i32, %c0_i32_0 : i32, i32
  }
  func.func @transform_2(%arg0: i32, %arg1: i32) -> (i32, i32) {
    %c0_i32 = arith.constant 0 : i32
    %c0_i32_0 = arith.constant 0 : i32
    return %c0_i32, %arg1 : i32, i32
  }
  func.func @transform_3(%arg0: i32, %arg1: i32) -> (i32, i32) {
    %c0_i32 = arith.constant 0 : i32
    %c0_i32_0 = arith.constant 0 : i32
    return %c0_i32, %arg1 : i32, i32
  }
  func.func @transform_4(%arg0: i32, %arg1: i32) -> (i32, i32) {
    %c0_i32 = arith.constant 0 : i32
    return %arg0, %arg1 : i32, i32
  }
}

</mosaic_0001>

<bundles_post_ra>
// kernel: vit_classifier_head_pallas.1
= control target key start
LH: loop header
LB: loop body
LE: loop exit
PB: predicated region body
PF: predicated region fallthrough
CT: control target
= control target key end

     0   :  { %9 = vsyncpa [#allocation3], 0  ;;  %s322_s0 = inlined_call_operand.hbm [shape: f32[16,32], index: 0, kind: input, shape index: {}]   ;;  %s323_s1 = inlined_call_operand.vmem [shape: f32[2,32], index: 1, kind: input, shape index: {}]   ;;  %s324_s2 = inlined_call_operand.hbm [shape: bf16[32,128], index: 2, kind: input, shape index: {}]   ;;  %s325_s3 = inlined_call_operand.vmem [shape: f32[1,128], index: 3, kind: input, shape index: {}]   ;;  %s326_s4 = inlined_call_operand.vmem [shape: f32[16,128], index: 4, kind: output, shape index: {}]  }
   0x1   :  { %10 = vsyncpa [#allocation5], 0  ;;  %s245_s15 = smov [#allocation2]   ;;  %s197_s19 = scalar_lea.hbm %s322_s0, 256 }
   0x2   :  { %s16_s16 = sshll.u32 %s245_s15, 4  ;;  %p198_p0 = scmp.ne.s32.totalorder %s322_s0, %s197_s19  ;;  %s17_s16 = int_to_ptr.vmem [resolvable:$true] %s16_s16 }
   0x3   :  { %p201_p1 = scmp.lt.u32.totalorder %s197_s19, %s322_s0 }
   0x5   :  { %p203_p2 = pnand %p201_p1, %p198_p0 }
   0x7   :  { %206 = shalt.err (!%p203_p2)
}
   0x8   :  { %s207_s24 = scalar_lea.vmem %s17_s16, 256  ;;  %p212_p4 = scmp.lt.s32.totalorder %s17_s16, %s17_s16 }
   0x9   :  { %p208_p3 = scmp.ne.s32.totalorder %s17_s16, %s207_s24  ;;  %p213_p5 = scmp.lt.s32.totalorder %s207_s24, %s207_s24 }
   0xb   :  { %p214_p6 = por %p213_p5, %p212_p4 }
   0xd   :  { %p215_p7 = pnand %p214_p6, %p208_p3 }
   0xf   :  { %218 = shalt.err (!%p215_p7)
}
  0x10   :  { %s246_s25 = smov 128   ;;  %s247_s26 = smov 8  }
  0x11   :  { %22 = dma.hbm_to_vmem [thread:$0]  %s322_s0, 256, %s17_s16, [#allocation3], %s246_s25, %s246_s25, %s247_s26  }
  0x12   :  { %s248_s29 = smov [#allocation4]   ;;  %s219_s7 = scalar_lea.hbm %s324_s2, 256 }
  0x13   :  { %s30_s30 = sshll.u32 %s248_s29, 4  ;;  %p220_p8 = scmp.ne.s32.totalorder %s324_s2, %s219_s7  ;;  %s31_s30 = int_to_ptr.vmem [resolvable:$true] %s30_s30 }
  0x14   :  { %p223_p9 = scmp.lt.u32.totalorder %s219_s7, %s324_s2 }
  0x16   :  { %p225_p10 = pnand %p223_p9, %p220_p8 }
  0x18   :  { %228 = shalt.err (!%p225_p10)
}
  0x19   :  { %s229_s12 = scalar_lea.vmem %s31_s30, 256  ;;  %p234_p12 = scmp.lt.s32.totalorder %s31_s30, %s31_s30 }
  0x1a   :  { %p230_p11 = scmp.ne.s32.totalorder %s31_s30, %s229_s12  ;;  %p235_p13 = scmp.lt.s32.totalorder %s229_s12, %s229_s12 }
  0x1c   :  { %p236_p0 = por %p235_p13, %p234_p12 }
  0x1e   :  { %p237_p1 = pnand %p236_p0, %p230_p11 }
  0x20   :  { %240 = shalt.err (!%p237_p1)
}
  0x21   :  { %s249_s0 = smov 64   ;;  %s250_s13 = smov 4  }
  0x22   :  { %36 = dma.hbm_to_vmem [thread:$0]  %s324_s2, 256, %s31_s30, [#allocation5], %s249_s0, %s249_s0, %s250_s13  }
  0x23   :  { %241 = dma.done.wait [#allocation3], 256  }
  0x24   :  { %242 = vsyncadd [#allocation3], 4294967040 }
  0x25   :  { %243 = dma.done.wait [#allocation5], 256  }
  0x26   :  { %244 = vsyncadd [#allocation5], 4294967040  ;;  %vm50_vm0 = vcmask 261120   ;;  %v46_v0 = vld [vmem:[#allocation2] sm:$0xff]  ;;  %v47_v1 = vld [vmem:[#allocation2 + $0x8] sm:$0xff]  ;;  %v251_v15 = vmov 0.0  }
  0x27   :  { %v51_v2 = vsel %vm50_vm0, %v46_v0, 0.0  ;;  %v54_v3 = vsel %vm50_vm0, %v47_v1, 0.0  ;;  %v191_v14 = vld [vmem:[#allocation4] sm:$0xff]   ;;  %175 = vmatprep.subr.bf16.mxu0 %v251_v15  ;;  %v192_v16 = vld [vmem:[#allocation4 + $0x8] sm:$0xff]   ;;  %vm252_vm1 = vmmov 0  }
  0x28   :  { %52 = vadd.xlane.f32.xlu0 %v51_v2  ;;  %176 = vmatpush3.bf16.msra.mxu0 %v191_v14  ;;  %v166_v25 = vld [vmem:[%s323_s1] ss:$0 sm:$0xff]  ;;  %v167_v29 = vld [vmem:[%s323_s1 + $0x1] ss:$0 sm:$0xff] }
  0x29   :  { %179 = vmatprep.mubr.msk.bf16.mxu0 %vm252_vm1, %v251_v15  ;;  %177 = vmatprep.subr.bf16.mxu0 %v251_v15  ;;  %v168_v34 = vld [vmem:[%s325_s3] ss:$0 sm:$0xff] }
  0x2c   :  { %55 = vadd.xlane.f32.xlu0 %v54_v3  ;;  %178 = vmatpush3.bf16.msra.mxu0 %v192_v16 }
  0xb5   :  { %v53_v4 = vpop.xlane.xlu0 %52 }
  0xb6   :  { %v58_v5 = vmul.f32 0.03125, %v53_v4 }
  0xb8   :  { %v60_v6 = vsub.f32 %v46_v0, %v58_v5 }
  0xb9   :  { %v56_v7 = vpop.xlane.xlu0 %55 }
  0xba   :  { %v59_v8 = vmul.f32 0.03125, %v56_v7  ;;  %v62_v9 = vmul.f32 %v60_v6, %v60_v6 }
  0xbc   :  { %v61_v10 = vsub.f32 %v47_v1, %v59_v8  ;;  %v64_v11 = vsel %vm50_vm0, %v62_v9, 0.0 }
  0xbd   :  { %65 = vadd.xlane.f32.xlu1 %v64_v11 }
  0xbe   :  { %v63_v12 = vmul.f32 %v61_v10, %v61_v10 }
  0xc0   :  { %v67_v13 = vsel %vm50_vm0, %v63_v12, 0.0 }
  0xc1   :  { %68 = vadd.xlane.f32.xlu1 %v67_v13 }
 0x14a   :  { %v66_v17 = vpop.xlane.xlu1 %65 }
 0x14b   :  { %v70_v18 = vmul.f32 0.03125, %v66_v17 }
 0x14d   :  { %v72_v19 = vadd.f32 1e-05, %v70_v18 }
 0x14e   :  { %v69_v20 = vpop.xlane.xlu1 %68 }
 0x14f   :  { %193 = vrsqrt.f32 %v72_v19  ;;  %v71_v21 = vmul.f32 0.03125, %v69_v20 }
 0x151   :  { %v73_v22 = vadd.f32 1e-05, %v71_v21 }
 0x153   :  { %195 = vrsqrt.f32 %v73_v22 }
 0x159   :  { %v194_v23 = vpop.eup %193 }
 0x15a   :  { %v76_v24 = vmul.f32 %v194_v23, %v60_v6 }
 0x15c   :  { %v82_v28 = vmul.f32 %v166_v25, %v76_v24 }
 0x15d   :  { %v196_v26 = vpop.eup %195 }
 0x15e   :  { %v77_v27 = vmul.f32 %v196_v26, %v61_v10  ;;  %v88_v31 = vadd.f32 %v167_v29, %v82_v28 }
 0x160   :  { %v83_v30 = vmul.f32 %v166_v25, %v77_v27 }
 0x162   :  { %v89_v32 = vadd.f32 %v167_v29, %v83_v30 }
 0x164   :  { %v90_v33 = vpack.c.bf16 %v89_v32, %v88_v31 }
 0x166   :  { %180 = vmatmul.mubr.msk.bf16.vlgmr.msra.gmra.mrb[0].mxu0 %vm50_vm0, %v90_v33 }
 0x239   :  { %v151_v35 = vpop.f32.mrb[0].mxu0 }
 0x23a   :  { %v152_v36 = vadd.f32 %v168_v34, %v151_v35  ;;  %v181_v37 = vpop.f32.mrb[1].mxu0 }
 0x23b   :  { %v154_v38 = vpop.f32.mrb[2].mxu0 }
 0x23c   :  { %158 = vst [vmem:[%s326_s4] sm:$0xff] %v152_v36  ;;  %v155_v39 = vadd.f32 %v168_v34, %v154_v38  ;;  %v182_v40 = vpop.f32.mrb[3].mxu0 }
 0x23e   :  { %159 = vst [vmem:[%s326_s4 + $0x8] sm:$0xff] %v155_v39 }
 0x23f   :  { %164 = vsyncpa [#allocation3], 1 }
 0x240   :  { %165 = vsyncpa [#allocation5], 1 }

</bundles_post_ra>
